<compile_context>
chip_gen: v5e
topology: v5e:2x2
jax: 0.10.0
libtpu: 0.0.40
codegen_flags: <defaults>
</compile_context>

<pallas_src>
import functools

import jax
import jax.numpy as jnp
from jax.experimental import pallas as pl
from jax.experimental.pallas import tpu as pltpu

_F32 = jnp.float32


# ----------------------------------------------------------------------------
# Kernels
# ----------------------------------------------------------------------------
def _epilogue(y, x_f32, b2, gamma, beta, eps, out_dtype):
    # bias + residual + LayerNorm (biased variance, eps inside sqrt), all f32.
    # TODO(synk): dropout is identity in eval/inference mode; not applied.
    y = y + b2 + x_f32
    mean = jnp.mean(y, axis=-1, keepdims=True)
    c = y - mean
    var = jnp.mean(c * c, axis=-1, keepdims=True)
    inv = jax.lax.rsqrt(var + eps)
    return (c * inv * gamma + beta).astype(out_dtype)


def _ffn_kernel_resident(x_ref, w1t_ref, b1_ref, w2t_ref, b2_ref,
                         gamma_ref, beta_ref, o_ref, *, eps):
    # Whole W1^T / W2^T stay VMEM-resident (constant index_map): no H-chunk
    # loop, no accumulator RMW, weights DMA'd from HBM only once.
    x_mxu = x_ref[...].astype(w1t_ref.dtype)              # bf16 feed to MXU
    h = jnp.dot(x_mxu, w1t_ref[...], preferred_element_type=_F32)
    h = jnp.maximum(h + b1_ref[...].astype(_F32), 0.0)
    y = jnp.dot(h.astype(w2t_ref.dtype), w2t_ref[...],
                preferred_element_type=_F32)
    o_ref[...] = _epilogue(y, x_ref[...].astype(_F32),
                           b2_ref[...].astype(_F32),
                           gamma_ref[...].astype(_F32),
                           beta_ref[...].astype(_F32), eps, o_ref.dtype)


def _ffn_kernel_chunked(x_ref, w1t_ref, b1_ref, w2t_ref, b2_ref,
                        gamma_ref, beta_ref, o_ref, acc_ref, *, eps):
    # Grid: (token tiles, H chunks); H chunk axis is the (innermost) reduction.
    k = pl.program_id(1)

    x_mxu = x_ref[...].astype(w1t_ref.dtype)              # bf16 feed to MXU
    h = jnp.dot(x_mxu, w1t_ref[...], preferred_element_type=_F32)
    h = jnp.maximum(h + b1_ref[...].astype(_F32), 0.0)
    contrib = jnp.dot(h.astype(w2t_ref.dtype), w2t_ref[...],
                      preferred_element_type=_F32)

    @pl.when(k == 0)
    def _():
        acc_ref[...] = contrib          # direct write: no zero-init + += pass

    @pl.when(k > 0)
    def _():
        acc_ref[...] += contrib

    @pl.when(k == pl.num_programs(1) - 1)
    def _():
        o_ref[...] = _epilogue(acc_ref[...], x_ref[...].astype(_F32),
                               b2_ref[...].astype(_F32),
                               gamma_ref[...].astype(_F32),
                               beta_ref[...].astype(_F32), eps, o_ref.dtype)


# ----------------------------------------------------------------------------
# Tiling / VMEM budgeting helpers
# ----------------------------------------------------------------------------
def _hw_vmem_budget():
    """~75% of the per-core VMEM capacity (≈48 MiB v7x, ≈96 MiB v5e/v6e)."""
    try:
        cap = int(pltpu.get_tpu_info().vmem_capacity_bytes)
    except Exception:
        cap = 64 * 1024 * 1024          # conservative fallback (v7x per-TC)
    return int(cap * 3 // 4)


def _resident_footprint(tm, D, H, x_item, w_item):
    return (2 * tm * D * x_item            # x tile (double-buffered)
            + 2 * tm * D * x_item          # out tile
            + 2 * (D * H + H * D) * w_item  # W1^T + W2^T (buffer-conservative)
            + 2 * (H + 3 * D) * 4          # b1, b2, gamma, beta
            + tm * H * 4                   # h intermediate (f32)
            + 4 * tm * D * 4)              # epilogue temps / headroom


def _chunked_footprint(tm, th, D, x_item, w_item):
    return (2 * tm * D * x_item            # x tile
            + 2 * tm * D * x_item          # out tile
            + 2 * (D * th + th * D) * w_item   # W1^T / W2^T chunks
            + 2 * (th + 3 * D) * 4
            + tm * D * 4                   # f32 accumulator scratch
            + tm * th * 4                  # h chunk (f32)
            + 4 * tm * D * 4)              # epilogue temps / headroom


def _sanitize_tm(t, N):
    t = min(t, N)
    if t < N:
        t = max(8, (t // 8) * 8)           # keep sublane-legal unless full-N
    return t


# ----------------------------------------------------------------------------
# Public API
# ----------------------------------------------------------------------------
def prepare_ffn_params(w1, b1, w2, b2, gamma, beta, *, mxu_dtype=jnp.bfloat16):
    """One-time parameter prep (hoisted out of the per-call hot path).

    Conv1d(k=1) weights are pre-transposed to row-major matmul operands and
    pre-cast to the MXU feed dtype (bf16 by default); biases / LN affine stay
    f32 for the f32 epilogue.
      w1: [H, D] -> W1^T [D, H]      w2: [D, H] -> W2^T [H, D]
    """
    w1t = jnp.asarray(w1).T.astype(mxu_dtype)
    w2t = jnp.asarray(w2).T.astype(mxu_dtype)
    b1r = jnp.asarray(b1, _F32).reshape(1, -1)
    b2r = jnp.asarray(b2, _F32).reshape(1, -1)
    gammar = jnp.asarray(gamma, _F32).reshape(1, -1)
    betar = jnp.asarray(beta, _F32).reshape(1, -1)
    return (w1t, b1r, w2t, b2r, gammar, betar)


def positionwise_ffn(x, params, *, eps=1e-5, tm=512, th_max=2048):
    """x: [B, L, D]; params from prepare_ffn_params(). Returns [B, L, D]."""
    w1t, b1r, w2t, b2r, gammar, betar = params
    B, L, D = x.shape
    H = w1t.shape[1]
    N = B * L
    x2 = x.reshape(N, D)                   # token slab, feature dim = lane dim

    x_item = x2.dtype.itemsize
    w_item = w1t.dtype.itemsize
    budget = _hw_vmem_budget()

    # ---- tiling selection ---------------------------------------------------
    tm_cands = sorted({_sanitize_tm(t, N) for t in (tm, 1024, 512, 256, 128)},
                      reverse=True)
    plan = None
    for tmc in tm_cands:                   # resident-weight fast path first
        est = _resident_footprint(tmc, D, H, x_item, w_item)
        if est <= budget:
            plan = ("resident", tmc, H, est)
            break
    if plan is None:                       # chunked fallback for huge weights
        for tmc in tm_cands:
            for cand in range(min(th_max, H), 0, -1):
                if H % cand != 0:
                    continue
                if cand != H and cand % 128 != 0:   # lane-legal chunk
                    continue
                if _chunked_footprint(tmc, cand, D, x_item, w_item) <= budget:
                    plan = ("chunked", tmc, cand,
                            _chunked_footprint(tmc, cand, D, x_item, w_item))
                    break
            if plan is not None:
                break
    if plan is None:
        raise ValueError("positionwise_ffn: no tiling fits the VMEM budget")

    mode, tm, th, est = plan
    vmem_limit = int(min(budget, max(32 * 1024 * 1024, 2 * est)))
    n_tok_tiles = pl.cdiv(N, tm)

    weight_bytes = (w1t.size + w2t.size) * w_item
    small_bytes = (b1r.size + b2r.size + gammar.size + betar.size) * 4
    w_traffic = weight_bytes if mode == "resident" else weight_bytes * n_tok_tiles
    cost = pl.CostEstimate(
        flops=4 * N * D * H,
        transcendentals=N,                 # one rsqrt per token row
        bytes_accessed=2 * N * D * x_item + w_traffic + small_bytes)

    if mode == "resident":
        out = pl.pallas_call(
            functools.partial(_ffn_kernel_resident, eps=eps),
            out_shape=jax.ShapeDtypeStruct((N, D), x.dtype),
            grid_spec=pltpu.PrefetchScalarGridSpec(
                num_scalar_prefetch=0,
                grid=(n_tok_tiles,),
                in_specs=[
                    pl.BlockSpec((tm, D), lambda i: (i, 0)),   # x tile
                    pl.BlockSpec((D, H), lambda i: (0, 0)),    # W1^T (resident)
                    pl.BlockSpec((1, H), lambda i: (0, 0)),    # b1
                    pl.BlockSpec((H, D), lambda i: (0, 0)),    # W2^T (resident)
                    pl.BlockSpec((1, D), lambda i: (0, 0)),    # b2
                    pl.BlockSpec((1, D), lambda i: (0, 0)),    # gamma
                    pl.BlockSpec((1, D), lambda i: (0, 0)),    # beta
                ],
                out_specs=pl.BlockSpec((tm, D), lambda i: (i, 0)),
            ),
            compiler_params=pltpu.CompilerParams(
                dimension_semantics=("parallel",),
                vmem_limit_bytes=vmem_limit),
            cost_estimate=cost,
        )(x2, w1t, b1r, w2t, b2r, gammar, betar)
    else:
        out = pl.pallas_call(
            functools.partial(_ffn_kernel_chunked, eps=eps),
            out_shape=jax.ShapeDtypeStruct((N, D), x.dtype),
            grid_spec=pltpu.PrefetchScalarGridSpec(
                num_scalar_prefetch=0,
                grid=(n_tok_tiles, H // th),
                in_specs=[
                    pl.BlockSpec((tm, D), lambda i, k: (i, 0)),   # x tile
                    pl.BlockSpec((D, th), lambda i, k: (0, k)),   # W1^T chunk
                    pl.BlockSpec((1, th), lambda i, k: (0, k)),   # b1 chunk
                    pl.BlockSpec((th, D), lambda i, k: (k, 0)),   # W2^T chunk
                    pl.BlockSpec((1, D), lambda i, k: (0, 0)),    # b2
                    pl.BlockSpec((1, D), lambda i, k: (0, 0)),    # gamma
                    pl.BlockSpec((1, D), lambda i, k: (0, 0)),    # beta
                ],
                out_specs=pl.BlockSpec((tm, D), lambda i, k: (i, 0)),
                scratch_shapes=[pltpu.VMEM((tm, D), jnp.float32)],
            ),
            compiler_params=pltpu.CompilerParams(
                dimension_semantics=("parallel", "arbitrary"),
                vmem_limit_bytes=vmem_limit),
            cost_estimate=cost,
        )(x2, w1t, b1r, w2t, b2r, gammar, betar)

    return out.reshape(B, L, D)


# ----------------------------------------------------------------------------
# Pure-JAX reference (dropout = identity), with optional dtype mirroring
# ----------------------------------------------------------------------------
def _reference(x, w1, b1, w2, b2, gamma, beta, eps=1e-5, mxu_dtype=jnp.float32):
    xc = x.astype(mxu_dtype)
    h = jnp.einsum('bld,dh->blh', xc, w1.T.astype(mxu_dtype),
                   preferred_element_type=jnp.float32)
    h = jnp.maximum(h + b1.astype(jnp.float32), 0.0)
    y = jnp.einsum('blh,hd->bld', h.astype(mxu_dtype), w2.T.astype(mxu_dtype),
                   preferred_element_type=jnp.float32)
    y = y + b2.astype(jnp.float32) + x.astype(jnp.float32)
    mean = jnp.mean(y, axis=-1, keepdims=True)
    var = jnp.mean((y - mean) ** 2, axis=-1, keepdims=True)
    out = (y - mean) * jax.lax.rsqrt(var + eps) * gamma + beta
    return out.astype(x.dtype)


if __name__ == "__main__":
    # config: transformer_size=32, inner_hidden_size=64, batch=2, max_len=8
    B, L, D, H = 2, 8, 32, 64

    key = jax.random.PRNGKey(0)
    kx, k1, k2, k3, k4 = jax.random.split(key, 5)

    x = jax.random.normal(kx, (B, L, D), dtype=jnp.float32)

    # Conv1d(D->H, k=1) weight is [H, D, 1]; the k=1 axis is squeezed, so we
    # init [H, D] / [D, H] directly (deterministic synthetic params).
    w1 = jax.random.normal(k1, (H, D), dtype=jnp.float32) * (1.0 / jnp.sqrt(D))
    b1 = jax.random.normal(k2, (H,), dtype=jnp.float32) * 0.01
    w2 = jax.random.normal(k3, (D, H), dtype=jnp.float32) * (1.0 / jnp.sqrt(H))
    b2 = jax.random.normal(k4, (D,), dtype=jnp.float32) * 0.01
    gamma = jnp.ones((D,), dtype=jnp.float32)
    beta = jnp.zeros((D,), dtype=jnp.float32)

    params = prepare_ffn_params(w1, b1, w2, b2, gamma, beta)  # one-time prep
    out = jax.block_until_ready(positionwise_ffn(x, params))
    assert out.shape == (B, L, D)

    # Tight check vs. a reference mirroring the kernel's bf16 MXU feeds.
    ref_bf16 = _reference(x, w1, b1, w2, b2, gamma, beta, mxu_dtype=jnp.bfloat16)
    assert jnp.allclose(out, ref_bf16, atol=2e-3, rtol=2e-3), (
        float(jnp.max(jnp.abs(out - ref_bf16))))
    # Loose sanity check vs. the full-f32 math of the PyTorch module.
    ref_f32 = _reference(x, w1, b1, w2, b2, gamma, beta, mxu_dtype=jnp.float32)
    assert jnp.allclose(out, ref_f32, atol=7.5e-2, rtol=7.5e-2), (
        float(jnp.max(jnp.abs(out - ref_f32))))

    print("KERNEL_OK")
</pallas_src>

<mosaic_0001>
module attributes {stable_mosaic.version = 11 : i64} {
  func.func @_ffn_kernel_resident(%arg0: i32, %arg1: memref<16x32xf32, #tpu.memory_space<vmem>>, %arg2: memref<32x64xbf16, #tpu.memory_space<vmem>>, %arg3: memref<1x64xf32, #tpu.memory_space<vmem>>, %arg4: memref<64x32xbf16, #tpu.memory_space<vmem>>, %arg5: memref<1x32xf32, #tpu.memory_space<vmem>>, %arg6: memref<1x32xf32, #tpu.memory_space<vmem>>, %arg7: memref<1x32xf32, #tpu.memory_space<vmem>>, %arg8: memref<16x32xf32, #tpu.memory_space<vmem>>) attributes {dimension_semantics = [#tpu.dimension_semantics<parallel>], iteration_bounds = array<i64: 1>, scalar_prefetch = 0 : i64, scratch_operands = 0 : i64, tpu.core_type = #tpu.core_type<tc>, window_params = [{transform_indices = @transform_0, window_bounds = array<i64: 16, 32>}, {pipeline_mode = #tpu.pipeline_mode<synchronous>, transform_indices = @transform_1, window_bounds = array<i64: 32, 64>}, {pipeline_mode = #tpu.pipeline_mode<synchronous>, transform_indices = @transform_2, window_bounds = array<i64: 1, 64>}, {pipeline_mode = #tpu.pipeline_mode<synchronous>, transform_indices = @transform_3, window_bounds = array<i64: 64, 32>}, {pipeline_mode = #tpu.pipeline_mode<synchronous>, transform_indices = @transform_4, window_bounds = array<i64: 1, 32>}, {pipeline_mode = #tpu.pipeline_mode<synchronous>, transform_indices = @transform_5, window_bounds = array<i64: 1, 32>}, {pipeline_mode = #tpu.pipeline_mode<synchronous>, transform_indices = @transform_6, window_bounds = array<i64: 1, 32>}, {transform_indices = @transform_7, window_bounds = array<i64: 16, 32>}]} {
    %c0 = arith.constant 0 : index
    %c0_0 = arith.constant 0 : index
    %0 = vector.load %arg1[%c0, %c0_0] : memref<16x32xf32, #tpu.memory_space<vmem>>, vector<16x32xf32>
    %1 = arith.truncf %0 : vector<16x32xf32> to vector<16x32xbf16>
    %c0_1 = arith.constant 0 : index
    %c0_2 = arith.constant 0 : index
    %2 = vector.load %arg2[%c0_1, %c0_2] : memref<32x64xbf16, #tpu.memory_space<vmem>>, vector<32x64xbf16>
    %cst = arith.constant dense<0.000000e+00> : vector<16x64xf32>
    %3 = tpu.matmul %1, %2, %cst {dimension_numbers = #tpu.dot_dimension_numbers<[1], [0], [0], [1], [0, 0, 1, 1], [], []>} : vector<16x32xbf16>, vector<32x64xbf16>, vector<16x64xf32> -> vector<16x64xf32>
    %c0_3 = arith.constant 0 : index
    %c0_4 = arith.constant 0 : index
    %4 = vector.load %arg3[%c0_3, %c0_4] : memref<1x64xf32, #tpu.memory_space<vmem>>, vector<1x64xf32>
    %5 = vector.broadcast %4 : vector<1x64xf32> to vector<16x64xf32>
    %6 = arith.addf %3, %5 : vector<16x64xf32>
    %cst_5 = arith.constant 0.000000e+00 : f32
    %7 = vector.broadcast %cst_5 : f32 to vector<16x64xf32>
    %8 = arith.maximumf %6, %7 : vector<16x64xf32>
    %9 = arith.truncf %8 : vector<16x64xf32> to vector<16x64xbf16>
    %c0_6 = arith.constant 0 : index
    %c0_7 = arith.constant 0 : index
    %10 = vector.load %arg4[%c0_6, %c0_7] : memref<64x32xbf16, #tpu.memory_space<vmem>>, vector<64x32xbf16>
    %cst_8 = arith.constant dense<0.000000e+00> : vector<16x32xf32>
    %11 = tpu.matmul %9, %10, %cst_8 {dimension_numbers = #tpu.dot_dimension_numbers<[1], [0], [0], [1], [0, 0, 1, 1], [], []>} : vector<16x64xbf16>, vector<64x32xbf16>, vector<16x32xf32> -> vector<16x32xf32>
    %c0_9 = arith.constant 0 : index
    %c0_10 = arith.constant 0 : index
    %12 = vector.load %arg1[%c0_9, %c0_10] : memref<16x32xf32, #tpu.memory_space<vmem>>, vector<16x32xf32>
    %c0_11 = arith.constant 0 : index
    %c0_12 = arith.constant 0 : index
    %13 = vector.load %arg5[%c0_11, %c0_12] : memref<1x32xf32, #tpu.memory_space<vmem>>, vector<1x32xf32>
    %c0_13 = arith.constant 0 : index
    %c0_14 = arith.constant 0 : index
    %14 = vector.load %arg6[%c0_13, %c0_14] : memref<1x32xf32, #tpu.memory_space<vmem>>, vector<1x32xf32>
    %c0_15 = arith.constant 0 : index
    %c0_16 = arith.constant 0 : index
    %15 = vector.load %arg7[%c0_15, %c0_16] : memref<1x32xf32, #tpu.memory_space<vmem>>, vector<1x32xf32>
    %16 = vector.broadcast %13 : vector<1x32xf32> to vector<16x32xf32>
    %17 = arith.addf %11, %16 : vector<16x32xf32>
    %18 = arith.addf %17, %12 : vector<16x32xf32>
    %cst_17 = arith.constant dense<0.000000e+00> : vector<16xf32>
    %19 = vector.multi_reduction <add>, %18, %cst_17 [1] : vector<16x32xf32> to vector<16xf32>
    %20 = vector.shape_cast %19 : vector<16xf32> to vector<16x1xf32>
    %cst_18 = arith.constant 3.200000e+01 : f32
    %21 = vector.broadcast %cst_18 : f32 to vector<16x1xf32>
    %22 = arith.divf %20, %21 : vector<16x1xf32>
    %23 = vector.broadcast %22 : vector<16x1xf32> to vector<16x32xf32>
    %24 = arith.subf %18, %23 : vector<16x32xf32>
    %25 = arith.mulf %24, %24 : vector<16x32xf32>
    %cst_19 = arith.constant dense<0.000000e+00> : vector<16xf32>
    %26 = vector.multi_reduction <add>, %25, %cst_19 [1] : vector<16x32xf32> to vector<16xf32>
    %27 = vector.shape_cast %26 : vector<16xf32> to vector<16x1xf32>
    %cst_20 = arith.constant 3.200000e+01 : f32
    %28 = vector.broadcast %cst_20 : f32 to vector<16x1xf32>
    %29 = arith.divf %27, %28 : vector<16x1xf32>
    %cst_21 = arith.constant 9.99999974E-6 : f32
    %30 = vector.broadcast %cst_21 : f32 to vector<16x1xf32>
    %31 = arith.addf %29, %30 : vector<16x1xf32>
    %32 = math.rsqrt %31 : vector<16x1xf32>
    %33 = vector.broadcast %32 : vector<16x1xf32> to vector<16x32xf32>
    %34 = arith.mulf %24, %33 : vector<16x32xf32>
    %35 = vector.broadcast %14 : vector<1x32xf32> to vector<16x32xf32>
    %36 = arith.mulf %34, %35 : vector<16x32xf32>
    %37 = vector.broadcast %15 : vector<1x32xf32> to vector<16x32xf32>
    %38 = arith.addf %36, %37 : vector<16x32xf32>
    %c0_22 = arith.constant 0 : index
    %c0_23 = arith.constant 0 : index
    %39 = vector.load %arg8[%c0_22, %c0_23] : memref<16x32xf32, #tpu.memory_space<vmem>>, vector<16x32xf32>
    tpu.vector_store %arg8[%c0_22, %c0_23], %38 {strides = array<i32>} : memref<16x32xf32, #tpu.memory_space<vmem>>, vector<16x32xf32>,
    return
  }
  func.func @transform_0(%arg0: i32) -> (i32, i32) {
    %c0_i32 = arith.constant 0 : i32
    %c0_i32_0 = arith.constant 0 : i32
    return %arg0, %c0_i32 : i32, i32
  }
  func.func @transform_1(%arg0: i32) -> (i32, i32) {
    %c0_i32 = arith.constant 0 : i32
    %c0_i32_0 = arith.constant 0 : i32
    %c0_i32_1 = arith.constant 0 : i32
    return %c0_i32, %c0_i32_0 : i32, i32
  }
  func.func @transform_2(%arg0: i32) -> (i32, i32) {
    %c0_i32 = arith.constant 0 : i32
    %c0_i32_0 = arith.constant 0 : i32
    %c0_i32_1 = arith.constant 0 : i32
    return %c0_i32, %c0_i32_0 : i32, i32
  }
  func.func @transform_3(%arg0: i32) -> (i32, i32) {
    %c0_i32 = arith.constant 0 : i32
    %c0_i32_0 = arith.constant 0 : i32
    %c0_i32_1 = arith.constant 0 : i32
    return %c0_i32, %c0_i32_0 : i32, i32
  }
  func.func @transform_4(%arg0: i32) -> (i32, i32) {
    %c0_i32 = arith.constant 0 : i32
    %c0_i32_0 = arith.constant 0 : i32
    %c0_i32_1 = arith.constant 0 : i32
    return %c0_i32, %c0_i32_0 : i32, i32
  }
  func.func @transform_5(%arg0: i32) -> (i32, i32) {
    %c0_i32 = arith.constant 0 : i32
    %c0_i32_0 = arith.constant 0 : i32
    %c0_i32_1 = arith.constant 0 : i32
    return %c0_i32, %c0_i32_0 : i32, i32
  }
  func.func @transform_6(%arg0: i32) -> (i32, i32) {
    %c0_i32 = arith.constant 0 : i32
    %c0_i32_0 = arith.constant 0 : i32
    %c0_i32_1 = arith.constant 0 : i32
    return %c0_i32, %c0_i32_0 : i32, i32
  }
  func.func @transform_7(%arg0: i32) -> (i32, i32) {
    %c0_i32 = arith.constant 0 : i32
    %c0_i32_0 = arith.constant 0 : i32
    return %arg0, %c0_i32 : i32, i32
  }
}

</mosaic_0001>

<bundles_post_ra>
// kernel: tpu_custom_call.1
= control target key start
LH: loop header
LB: loop body
LE: loop exit
PB: predicated region body
PF: predicated region fallthrough
CT: control target
= control target key end

     0   :  { %s373_s0 = inlined_call_operand.vmem [shape: f32[16,32], index: 0, kind: input, shape index: {}]   ;;  %s374_s1 = inlined_call_operand.vmem [shape: bf16[32,64], index: 1, kind: input, shape index: {}]   ;;  %s375_s2 = inlined_call_operand.vmem [shape: f32[1,64], index: 2, kind: input, shape index: {}]   ;;  %s376_s3 = inlined_call_operand.vmem [shape: bf16[64,32], index: 3, kind: input, shape index: {}]   ;;  %s377_s4 = inlined_call_operand.vmem [shape: f32[1,32], index: 4, kind: input, shape index: {}]   ;;  %s378_s5 = inlined_call_operand.vmem [shape: f32[1,32], index: 5, kind: input, shape index: {}]   ;;  %s379_s6 = inlined_call_operand.vmem [shape: f32[1,32], index: 6, kind: input, shape index: {}]   ;;  %s380_s7 = inlined_call_operand.hbm [shape: f32[16,32], index: 7, kind: output, shape index: {}]  }
   0x1   :  { %v238_v0 = vld [vmem:[%s374_s1 + $0x8] sm:$0xff]  ;;  %v237_v1 = vld [vmem:[%s374_s1] sm:$0xff] }
   0x2   :  { %v28_v2 = vld [vmem:[%s373_s0] sm:$0xff]  ;;  %v29_v3 = vld [vmem:[%s373_s0 + $0x8] sm:$0xff]  ;;  %61 = vmatpush.bf16.msra.mxu0 %v238_v0 }
   0x3   :  { %12 = vsyncpa [#allocation3], 0  ;;  %v30_v4 = vpack.c.bf16 %v29_v3, %v28_v2  ;;  %vm51_vm0 = vcmask 261120   ;;  %v242_v5 = vld [vmem:[%s376_s3 + $0x18] sm:$0xff]  ;;  %v241_v6 = vld [vmem:[%s376_s3 + $0x10] sm:$0xff]  ;;  %vm110_vm1 = vcmask 523264  }
   0x4   :  { %118 = vmatpush.bf16.msra.mxu1 %v242_v5  ;;  %v240_v7 = vld [vmem:[%s376_s3 + $0x8] sm:$0xff]  ;;  %v239_v8 = vld [vmem:[%s376_s3] sm:$0xff]  ;;  %v283_v26 = vmov 32.0   ;;  %s199_s23 = sshll.u32 %s380_s7, 4  ;;  %s286_s24 = smov 8   ;;  %s200_s23 = int_to_ptr.hbm [resolvable:$true] %s199_s23 }
   0x5   :  { %v247_v10 = vld [vmem:[%s375_s2] ss:$0 sm:$0xff]  ;;  %251 = vrcp.f32 %v283_v26 }
   0x6   :  { %62 = vmatpush.bf16.msra.mxu0 %v237_v1  ;;  %v248_v17 = vld [vmem:[%s377_s4] ss:$0 sm:$0xff] }
   0x7   :  { %v249_v57 = vld [vmem:[%s378_s5] ss:$0 sm:$0xff]  ;;  %s284_s5 = smov [#allocation2]  }
   0x8   :  { %119 = vmatpush.bf16.msra.mxu1 %v241_v6  ;;  %v250_v61 = vld [vmem:[%s379_s6] ss:$0 sm:$0xff]  ;;  %s197_s20 = sshll.u32 %s284_s5, 4  ;;  %s285_s6 = smov 128   ;;  %s198_s20 = int_to_ptr.vmem [resolvable:$true] %s197_s20 }
   0x9   :  { %219 = vmatmul.msk.bf16.vlgmr.msra.gmra.mxu0 %vm51_vm0, %v30_v4 }
   0xb   :  { %v252_v27 = vpop.eup %251 }
   0xc   :  { %120 = vmatpush.bf16.msra.mxu1 %v240_v7  ;;  %v137_v28 = vmul.f32 32.0, %v252_v27  ;;  %vm141_vm2 = vweird.f32 %v252_v27 }
   0xe   :  { %v138_v29 = vsub.f32 1.0, %v137_v28 }
  0x10   :  { %121 = vmatpush.bf16.msra.mxu1 %v239_v8  ;;  %v139_v30 = vmul.f32 %v252_v27, %v138_v29 }
  0x12   :  { %v140_v31 = vadd.f32 %v252_v27, %v139_v30 }
  0x14   :  { %v142_v32 = vsel %vm141_vm2, %v252_v27, %v140_v31 }
  0x86   :  { %v64_v9 = vpop.f32.mrf.mxu0 }
  0x87   :  { %v65_v11 = vadd.f32 %v247_v10, %v64_v9 }
  0x89   :  { %v69_v14 = vmax.f32 %v65_v11, 0.0 }
  0x8e   :  { %v66_v12 = vpop.f32.mrf.mxu0 }
  0x8f   :  { %v67_v13 = vadd.f32 %v247_v10, %v66_v12 }
  0x91   :  { %v70_v15 = vmax.f32 %v67_v13, 0.0 }
  0x93   :  { %v71_v16 = vpack.c.bf16 %v70_v15, %v69_v14 }
  0x95   :  { %236 = vmatmul.msk.bf16.vlgmr.msra.gmra.mxu1 %vm110_vm1, %v71_v16 }
 0x112   :  { %v123_v18 = vpop.f32.mrf.mxu1 }
 0x113   :  { %v124_v19 = vadd.f32 %v248_v17, %v123_v18 }
 0x115   :  { %v128_v20 = vadd.f32 %v124_v19, %v28_v2 }
 0x117   :  { %v130_v21 = vsel %vm51_vm0, %v128_v20, 0.0 }
 0x118   :  { %131 = vadd.xlane.f32.xlu0 %v130_v21 }
 0x11a   :  { %v125_v22 = vpop.f32.mrf.mxu1 }
 0x11b   :  { %v126_v23 = vadd.f32 %v248_v17, %v125_v22 }
 0x11d   :  { %v129_v24 = vadd.f32 %v126_v23, %v29_v3 }
 0x11f   :  { %v133_v25 = vsel %vm51_vm0, %v129_v24, 0.0 }
 0x120   :  { %134 = vadd.xlane.f32.xlu0 %v133_v25 }
 0x18b   :  { %v132_v33 = vpop.xlane.xlu0 %131 }
 0x18c   :  { %v143_v34 = vmul.f32 %v142_v32, %v132_v33 }
 0x18e   :  { %v145_v35 = vsub.f32 %v128_v20, %v143_v34 }
 0x190   :  { %v147_v36 = vmul.f32 %v145_v35, %v145_v35 }
 0x192   :  { %v149_v37 = vsel %vm51_vm0, %v147_v36, 0.0 }
 0x193   :  { %150 = vadd.xlane.f32.xlu1 %v149_v37  ;;  %v135_v38 = vpop.xlane.xlu0 %134 }
 0x194   :  { %v144_v39 = vmul.f32 %v142_v32, %v135_v38 }
 0x196   :  { %v146_v40 = vsub.f32 %v129_v24, %v144_v39 }
 0x198   :  { %v148_v41 = vmul.f32 %v146_v40, %v146_v40 }
 0x19a   :  { %v152_v42 = vsel %vm51_vm0, %v148_v41, 0.0 }
 0x19b   :  { %153 = vadd.xlane.f32.xlu1 %v152_v42 }
 0x206   :  { %v151_v43 = vpop.xlane.xlu1 %150 }
 0x207   :  { %v155_v44 = vmul.f32 %v151_v43, %v142_v32 }
 0x209   :  { %v157_v45 = vadd.f32 1e-05, %v155_v44 }
 0x20b   :  { %253 = vrsqrt.f32 %v157_v45  ;;  %vm165_vm4 = vweird.f32 %v157_v45 }
 0x20e   :  { %v154_v46 = vpop.xlane.xlu1 %153 }
 0x20f   :  { %v156_v47 = vmul.f32 %v154_v46, %v142_v32 }
 0x211   :  { %v254_v48 = vpop.eup %253  ;;  %v158_v49 = vadd.f32 1e-05, %v156_v47 }
 0x212   :  { %v160_v50 = vmul.f32 %v254_v48, %v157_v45  ;;  %vm166_vm3 = vweird.f32 %v254_v48 }
 0x213   :  { %255 = vrsqrt.f32 %v158_v49  ;;  %vm167_vm5 = vmor %vm165_vm4, %vm166_vm3  ;;  %vm175_vm7 = vweird.f32 %v158_v49 }
 0x214   :  { %v161_v51 = vmul.f32 %v254_v48, %v160_v50 }
 0x216   :  { %v162_v52 = vmul.f32 0.5, %v161_v51 }
 0x218   :  { %v163_v53 = vsub.f32 1.5, %v162_v52 }
 0x219   :  { %v256_v54 = vpop.eup %255 }
 0x21a   :  { %v164_v55 = vmul.f32 %v254_v48, %v163_v53  ;;  %v170_v56 = vmul.f32 %v256_v54, %v158_v49  ;;  %vm176_vm6 = vweird.f32 %v256_v54 }
 0x21b   :  { %vm177_vm8 = vmor %vm175_vm7, %vm176_vm6 }
 0x21c   :  { %v168_v58 = vsel %vm167_vm5, %v254_v48, %v164_v55  ;;  %v171_v59 = vmul.f32 %v256_v54, %v170_v56 }
 0x21d   :  { %v179_v60 = vmul.f32 %v168_v58, %v145_v35 }
 0x21e   :  { %v172_v62 = vmul.f32 0.5, %v171_v59 }
 0x21f   :  { %v184_v63 = vmul.f32 %v249_v57, %v179_v60 }
 0x220   :  { %v173_v0 = vsub.f32 1.5, %v172_v62 }
 0x221   :  { %v189_v1 = vadd.f32 %v250_v61, %v184_v63 }
 0x222   :  { %v174_v2 = vmul.f32 %v256_v54, %v173_v0 }
 0x223   :  { %191 = vst.msk [vmem:[#allocation2] sm:$0xff] %vm51_vm0, %v189_v1 }
 0x224   :  { %v178_v3 = vsel %vm177_vm8, %v256_v54, %v174_v2 }
 0x225   :  { %v180_v4 = vmul.f32 %v178_v3, %v146_v40 }
 0x227   :  { %v185_v5 = vmul.f32 %v249_v57, %v180_v4 }
 0x229   :  { %v190_v6 = vadd.f32 %v250_v61, %v185_v5 }
 0x22b   :  { %192 = vst.msk [vmem:[#allocation2 + $0x8] sm:$0xff] %vm51_vm0, %v190_v6 }
 0x22c   :  { %205 = dma.vmem_to_hbm [thread:$0]  %s198_s20, 256, %s200_s23, [#allocation3], %s285_s6, %s285_s6, %s286_s24  }
 0x22d   :  { %281 = dma.done.wait [#allocation3], 256  }
 0x22e   :  { %282 = vsyncadd [#allocation3], 4294967040 }
 0x22f   :  { %210 = vsyncpa [#allocation3], 1 }

</bundles_post_ra>
